<compile_context>
chip_gen: v6e
topology: v6e:2x2x1
jax: 0.10.0
libtpu: 0.0.40
codegen_flags: <defaults>
</compile_context>

<pallas_src>
import functools

import jax
import jax.numpy as jnp
from jax.experimental import pallas as pl
from jax.experimental.pallas import tpu as pltpu


def _round_up(n, m):
    return int(pl.cdiv(n, m)) * m


def _mlp_kernel(x_ref, w1_ref, b1_ref, w2_ref, b2_ref, o_ref):
    # Layer 1: bf16 x bf16 -> f32 on the MXU; f32 bias + tanh epilogue (VPU/EUP).
    h = jnp.dot(x_ref[...], w1_ref[...], preferred_element_type=jnp.float32)
    h = jnp.tanh(h + b1_ref[...])  # b1 is (1, hidden) -> broadcasts over batch
    # Layer 2: cast activations back to bf16 for the MXU, accumulate in f32.
    y = jnp.dot(h.astype(jnp.bfloat16), w2_ref[...],
                preferred_element_type=jnp.float32)
    # Lane-dense (tile_b, 128*k) store.
    o_ref[...] = (y + b2_ref[...]).astype(o_ref.dtype)


@functools.partial(jax.jit, static_argnames=("tile_b",))
def another_small_net_forward(x, w1, b1, w2, b2, *, tile_b=256):
    """Forward pass of anotherSmallNet.

    x : [B, in_dim] float32
    w1: [in_dim, hidden] float32, b1: [1, hidden] float32
    w2: [hidden, out_dim] float32, b2: [1, out_dim] float32
    returns [B, out_dim] float32
    """
    B, in_dim = x.shape
    hidden = w1.shape[1]
    out_dim = w2.shape[1]

    # --- Lane-dense output: pad out_dim to a multiple of 128 with zero columns.
    out_pad = _round_up(out_dim, 128)
    w2p = jnp.zeros((hidden, out_pad), jnp.float32).at[:, :out_dim].set(w2)
    b2p = jnp.zeros((1, out_pad), jnp.float32).at[:, :out_dim].set(b2)

    # --- Batch tiling: 8-aligned tiles, batch padded up to a tile multiple.
    tb = min(int(tile_b), _round_up(B, 8))
    b_pad = _round_up(B, tb)
    if b_pad != B:
        x = jnp.pad(x, ((0, b_pad - B), (0, 0)))

    # --- bf16 MXU operands; biases stay f32 for the f32 epilogue.
    x_bf = x.astype(jnp.bfloat16)
    w1_bf = w1.astype(jnp.bfloat16)
    w2_bf = w2p.astype(jnp.bfloat16)
    b1_f = b1.astype(jnp.float32)

    grid = (b_pad // tb,)

    flops = 2 * b_pad * (in_dim * hidden + hidden * out_pad)
    bytes_accessed = (x_bf.size * 2 + w1_bf.size * 2 + w2_bf.size * 2
                      + b1_f.size * 4 + b2p.size * 4 + b_pad * out_pad * 4)
    cost = pl.CostEstimate(flops=flops,
                           transcendentals=b_pad * hidden,
                           bytes_accessed=bytes_accessed)

    out = pl.pallas_call(
        _mlp_kernel,
        out_shape=jax.ShapeDtypeStruct((b_pad, out_pad), jnp.float32),
        grid=grid,
        in_specs=[
            pl.BlockSpec((tb, in_dim), lambda i: (i, 0)),        # x: batch-tiled
            pl.BlockSpec((in_dim, hidden), lambda i: (0, 0)),    # w1: resident
            pl.BlockSpec((1, hidden), lambda i: (0, 0)),         # b1: resident
            pl.BlockSpec((hidden, out_pad), lambda i: (0, 0)),   # w2 (padded)
            pl.BlockSpec((1, out_pad), lambda i: (0, 0)),        # b2 (padded)
        ],
        out_specs=pl.BlockSpec((tb, out_pad), lambda i: (i, 0)),
        compiler_params=pltpu.CompilerParams(
            dimension_semantics=("parallel",)),
        cost_estimate=cost,
    )(x_bf, w1_bf, b1_f, w2_bf, b2p)

    # Strip batch and lane padding.
    return out[:B, :out_dim]


def init_params(key, in_dim, out_dim, hidden_dims=None):
    """Init mirroring weights_init_uniform_rule bounds:
    weights, biases ~ U(-1/sqrt(fan_in), 1/sqrt(fan_in)) (nonzero biases to
    exercise the bias path; forward semantics are identical)."""
    if hidden_dims is None:
        hidden_dims = [32]
    nn_dims = [in_dim] + hidden_dims + [out_dim]
    params = []
    for i in range(len(nn_dims) - 1):
        key, kw, kb = jax.random.split(key, 3)
        fan_in, fan_out = nn_dims[i], nn_dims[i + 1]
        bound = 1.0 / jnp.sqrt(jnp.float32(fan_in))
        w = jax.random.uniform(
            kw, (fan_in, fan_out), dtype=jnp.float32, minval=-bound, maxval=bound
        )
        b = jax.random.uniform(
            kb, (1, fan_out), dtype=jnp.float32, minval=-bound, maxval=bound
        )
        params.append((w, b))
    return params


def reference_forward(x, params):
    """Pure-JAX f32 reference matching the PyTorch module semantics."""
    h = x
    for i, (w, b) in enumerate(params):
        h = h @ w + b
        if i != len(params) - 1:
            h = jnp.tanh(h)
    return h


if __name__ == "__main__":
    key = jax.random.PRNGKey(0)

    batch, in_dim, out_dim = 512, 16, 8  # hidden defaults to [32]
    kx, kp = jax.random.split(key)
    x = jax.random.normal(kx, (batch, in_dim), dtype=jnp.float32)

    (w1, b1), (w2, b2) = init_params(kp, in_dim, out_dim)

    out = another_small_net_forward(x, w1, b1, w2, b2, tile_b=256)
    out = jax.block_until_ready(out)

    ref = reference_forward(x, [(w1, b1), (w2, b2)])
    assert out.shape == (batch, out_dim)
    # bf16 MXU operands with f32 accumulation => loosened tolerance vs f32 ref.
    assert jnp.allclose(out, ref, atol=2e-2, rtol=2e-2), float(
        jnp.max(jnp.abs(out - ref))
    )

    print("KERNEL_OK")
</pallas_src>

<mosaic_0001>
module attributes {stable_mosaic.version = 11 : i64} {
  func.func @_mlp_kernel(%arg0: i32, %arg1: memref<256x16xbf16, #tpu.memory_space<vmem>>, %arg2: memref<16x32xbf16, #tpu.memory_space<vmem>>, %arg3: memref<1x32xf32, #tpu.memory_space<vmem>>, %arg4: memref<32x128xbf16, #tpu.memory_space<vmem>>, %arg5: memref<1x128xf32, #tpu.memory_space<vmem>>, %arg6: memref<256x128xf32, #tpu.memory_space<vmem>>) attributes {dimension_semantics = [#tpu.dimension_semantics<parallel>], iteration_bounds = array<i64: 2>, scalar_prefetch = 0 : i64, scratch_operands = 0 : i64, tpu.core_type = #tpu.core_type<tc>, window_params = [{transform_indices = @transform_0, window_bounds = array<i64: 256, 16>}, {pipeline_mode = #tpu.pipeline_mode<synchronous>, transform_indices = @transform_1, window_bounds = array<i64: 16, 32>}, {pipeline_mode = #tpu.pipeline_mode<synchronous>, transform_indices = @transform_2, window_bounds = array<i64: 1, 32>}, {pipeline_mode = #tpu.pipeline_mode<synchronous>, transform_indices = @transform_3, window_bounds = array<i64: 32, 128>}, {pipeline_mode = #tpu.pipeline_mode<synchronous>, transform_indices = @transform_4, window_bounds = array<i64: 1, 128>}, {transform_indices = @transform_5, window_bounds = array<i64: 256, 128>}]} {
    %c0 = arith.constant 0 : index
    %c0_0 = arith.constant 0 : index
    %0 = vector.load %arg1[%c0, %c0_0] : memref<256x16xbf16, #tpu.memory_space<vmem>>, vector<256x16xbf16>
    %c0_1 = arith.constant 0 : index
    %c0_2 = arith.constant 0 : index
    %1 = vector.load %arg2[%c0_1, %c0_2] : memref<16x32xbf16, #tpu.memory_space<vmem>>, vector<16x32xbf16>
    %cst = arith.constant dense<0.000000e+00> : vector<256x32xf32>
    %2 = tpu.matmul %0, %1, %cst {dimension_numbers = #tpu.dot_dimension_numbers<[1], [0], [0], [1], [0, 0, 1, 1], [], []>} : vector<256x16xbf16>, vector<16x32xbf16>, vector<256x32xf32> -> vector<256x32xf32>
    %c0_3 = arith.constant 0 : index
    %c0_4 = arith.constant 0 : index
    %3 = vector.load %arg3[%c0_3, %c0_4] : memref<1x32xf32, #tpu.memory_space<vmem>>, vector<1x32xf32>
    %4 = vector.broadcast %3 : vector<1x32xf32> to vector<256x32xf32>
    %5 = arith.addf %2, %4 : vector<256x32xf32>
    %6 = math.tanh %5 : vector<256x32xf32>
    %7 = arith.truncf %6 : vector<256x32xf32> to vector<256x32xbf16>
    %c0_5 = arith.constant 0 : index
    %c0_6 = arith.constant 0 : index
    %8 = vector.load %arg4[%c0_5, %c0_6] : memref<32x128xbf16, #tpu.memory_space<vmem>>, vector<32x128xbf16>
    %cst_7 = arith.constant dense<0.000000e+00> : vector<256x128xf32>
    %9 = tpu.matmul %7, %8, %cst_7 {dimension_numbers = #tpu.dot_dimension_numbers<[1], [0], [0], [1], [0, 0, 1, 1], [], []>} : vector<256x32xbf16>, vector<32x128xbf16>, vector<256x128xf32> -> vector<256x128xf32>
    %c0_8 = arith.constant 0 : index
    %c0_9 = arith.constant 0 : index
    %10 = vector.load %arg5[%c0_8, %c0_9] : memref<1x128xf32, #tpu.memory_space<vmem>>, vector<1x128xf32>
    %11 = vector.broadcast %10 : vector<1x128xf32> to vector<256x128xf32>
    %12 = arith.addf %9, %11 : vector<256x128xf32>
    %c0_10 = arith.constant 0 : index
    %c0_11 = arith.constant 0 : index
    %13 = vector.load %arg6[%c0_10, %c0_11] : memref<256x128xf32, #tpu.memory_space<vmem>>, vector<256x128xf32>
    tpu.vector_store %arg6[%c0_10, %c0_11], %12 {strides = array<i32>} : memref<256x128xf32, #tpu.memory_space<vmem>>, vector<256x128xf32>,
    return
  }
  func.func @transform_0(%arg0: i32) -> (i32, i32) {
    %c0_i32 = arith.constant 0 : i32
    %c0_i32_0 = arith.constant 0 : i32
    return %arg0, %c0_i32 : i32, i32
  }
  func.func @transform_1(%arg0: i32) -> (i32, i32) {
    %c0_i32 = arith.constant 0 : i32
    %c0_i32_0 = arith.constant 0 : i32
    %c0_i32_1 = arith.constant 0 : i32
    return %c0_i32, %c0_i32_0 : i32, i32
  }
  func.func @transform_2(%arg0: i32) -> (i32, i32) {
    %c0_i32 = arith.constant 0 : i32
    %c0_i32_0 = arith.constant 0 : i32
    %c0_i32_1 = arith.constant 0 : i32
    return %c0_i32, %c0_i32_0 : i32, i32
  }
  func.func @transform_3(%arg0: i32) -> (i32, i32) {
    %c0_i32 = arith.constant 0 : i32
    %c0_i32_0 = arith.constant 0 : i32
    %c0_i32_1 = arith.constant 0 : i32
    return %c0_i32, %c0_i32_0 : i32, i32
  }
  func.func @transform_4(%arg0: i32) -> (i32, i32) {
    %c0_i32 = arith.constant 0 : i32
    %c0_i32_0 = arith.constant 0 : i32
    %c0_i32_1 = arith.constant 0 : i32
    return %c0_i32, %c0_i32_0 : i32, i32
  }
  func.func @transform_5(%arg0: i32) -> (i32, i32) {
    %c0_i32 = arith.constant 0 : i32
    %c0_i32_0 = arith.constant 0 : i32
    return %arg0, %c0_i32 : i32, i32
  }
}

</mosaic_0001>

<bundles_post_ra>
// kernel: another_small_net_forward.1
= control target key start
LH: loop header
LB: loop body
LE: loop exit
PB: predicated region body
PF: predicated region fallthrough
CT: control target
= control target key end

     0   :  { %s1233_s18 = smov 0   ;;  %s1421_s0 = inlined_call_operand.vmem [shape: bf16[512,16], index: 0, kind: input, shape index: {}]   ;;  %s1422_s1 = inlined_call_operand.vmem [shape: bf16[16,32], index: 1, kind: input, shape index: {}]   ;;  %s1423_s2 = inlined_call_operand.vmem [shape: f32[1,32], index: 2, kind: input, shape index: {}]   ;;  %s1424_s3 = inlined_call_operand.vmem [shape: bf16[32,128], index: 3, kind: input, shape index: {}]   ;;  %s1425_s4 = inlined_call_operand.vmem [shape: f32[1,128], index: 4, kind: input, shape index: {}]   ;;  %s1426_s5 = inlined_call_operand.vmem [shape: f32[512,128], index: 5, kind: output, shape index: {}]  }
   0x1 LB: > { %s935_s19 = sadd.s32 4294967295, %s1201_s18   ;;  %p939_p0 = scmp.ge.s32.totalorder %s1201_s18, 1  ;;  %s1201_s18 = sphi %s1233_s18, %s15_s18  }
   0x2   : > { %p188_p1 = scmp.lt.s32.totalorder %s1201_s18, 3 }
   0x4   : > { %p189_p2 = pnand %p939_p0, %p188_p1 }
   0x5   : > { %s940_s22 = sshll.u32 (!%p189_p2), %s935_s19, 5 }
   0x6   : > { %192 = sbr.rel (%p189_p2) target bundleno = 492 (0x1ec), region = 40  ;;  %p217_p3 = scmp.lt.s32.totalorder (!%p189_p2), %s940_s22, 63 }
   0xb   : > { %v1112_v0 = vld [vmem:[%s1422_s1] sm:$0xff]   ;;  %s1428_s22 = smov (!%p217_p3, %s940_s22), 63  ;;  %vm356_vm0 = vcmask 130048   ;;  %v1129_v17 = vld [vmem:[%s1424_s3 + $0x8] sm:$0xff]   ;;  %vm637_vm1 = vcmask 261120  }
   0xc   : > { %1034 = vmatprep.subr.bf16.mxu0 %v1112_v0  ;;  %s941_s23 = sshll.u32 %s1428_s22, 2  ;;  %1068 = vmatprep.subr.bf16.mxu1 %v1129_v17  ;;  %v1130_v18 = vld [vmem:[%s1424_s3] sm:$0xff]   ;;  %s943_s8 = sshll.u32 %s1428_s22, 3 }
   0xd   : > { %1035 = vmatpush3.bf16.msra.mxu0 %v1112_v0  ;;  %s1250_s26 = scalar_lea.vmem %s1421_s0, %s941_s23  ;;  %1069 = vmatpush3.bf16.msra.mxu1 %v1129_v17  ;;  %v1293_v20 = vld [vmem:[%s1423_s2] ss:$0 sm:$0xff]  ;;  %s1352_s13 = scalar_lea.vmem %s1426_s5, %s943_s8 }
   0xe   : > { %v1113_v1 = vld [vmem:[%s1250_s26] sm:$0xff]   ;;  %v1114_v2 = vld [vmem:[%s1250_s26 + $0x8] sm:$0xff]   ;;  %v1115_v3 = vld [vmem:[%s1250_s26 + $0x10] sm:$0xff]   ;;  %1070 = vmatprep.subr.bf16.mxu1 %v1130_v18 }
   0xf   : > { %1036 = vmatprep.mubr.msk.bf16.mxu0 %vm356_vm0, %v1113_v1  ;;  %v1116_v4 = vld [vmem:[%s1250_s26 + $0x18] sm:$0xff]   ;;  %v1117_v5 = vld [vmem:[%s1250_s26 + $0x20] sm:$0xff]   ;;  %v1118_v6 = vld [vmem:[%s1250_s26 + $0x28] sm:$0xff]  }
  0x10   : > { %1037 = vmatmul.mubr.msk.bf16.vlgmr.msra.gmra.mxu0 %vm356_vm0, %v1114_v2  ;;  %v1119_v7 = vld [vmem:[%s1250_s26 + $0x30] sm:$0xff]   ;;  %v1120_v8 = vld [vmem:[%s1250_s26 + $0x38] sm:$0xff]   ;;  %v1121_v9 = vld [vmem:[%s1250_s26 + $0x40] sm:$0xff]  }
  0x11   : > { %1040 = vmatprep.mubr.msk.bf16.mxu0 %vm356_vm0, %v1115_v3  ;;  %v1122_v10 = vld [vmem:[%s1250_s26 + $0x48] sm:$0xff]   ;;  %v1123_v11 = vld [vmem:[%s1250_s26 + $0x50] sm:$0xff]   ;;  %v1124_v12 = vld [vmem:[%s1250_s26 + $0x58] sm:$0xff]   ;;  %1071 = vmatpush3.bf16.msra.mxu1 %v1130_v18 }
  0x12   : > { %v1125_v13 = vld [vmem:[%s1250_s26 + $0x60] sm:$0xff]   ;;  %v1126_v14 = vld [vmem:[%s1250_s26 + $0x68] sm:$0xff]   ;;  %v1127_v15 = vld [vmem:[%s1250_s26 + $0x70] sm:$0xff]  }
  0x13   : > { %v1128_v16 = vld [vmem:[%s1250_s26 + $0x78] sm:$0xff]  }
  0x18   : > { %1041 = vmatmul.mubr.msk.bf16.gmra.mxu0 %vm356_vm0, %v1116_v4 }
  0x19   : > { %1044 = vmatprep.mubr.msk.bf16.mxu0 %vm356_vm0, %v1117_v5 }
  0x20   : > { %1045 = vmatmul.mubr.msk.bf16.gmra.mxu0 %vm356_vm0, %v1118_v6 }
  0x21   : > { %1048 = vmatprep.mubr.msk.bf16.mxu0 %vm356_vm0, %v1119_v7 }
  0x28   : > { %1049 = vmatmul.mubr.msk.bf16.gmra.mxu0 %vm356_vm0, %v1120_v8 }
  0x29   : > { %1052 = vmatprep.mubr.msk.bf16.mxu0 %vm356_vm0, %v1121_v9 }
  0x30   : > { %1053 = vmatmul.mubr.msk.bf16.gmra.mxu0 %vm356_vm0, %v1122_v10 }
  0x31   : > { %1056 = vmatprep.mubr.msk.bf16.mxu0 %vm356_vm0, %v1123_v11 }
  0x38   : > { %1057 = vmatmul.mubr.msk.bf16.gmra.mxu0 %vm356_vm0, %v1124_v12 }
  0x39   : > { %1060 = vmatprep.mubr.msk.bf16.mxu0 %vm356_vm0, %v1125_v13 }
  0x40   : > { %1061 = vmatmul.mubr.msk.bf16.gmra.mxu0 %vm356_vm0, %v1126_v14 }
  0x41   : > { %1064 = vmatprep.mubr.msk.bf16.mxu0 %vm356_vm0, %v1127_v15 }
  0x48   : > { %1065 = vmatmul.mubr.msk.bf16.gmra.mxu0 %vm356_vm0, %v1128_v16 }
  0xd0   : > { %v1038_v19 = vpop.f32.mrf.mxu0 }
  0xd1   : > { %v448_v25 = vadd.f32 %v1038_v19, %v1293_v20 }
  0xd2   : > { %v439_v21 = vpop.f32.mrf.mxu0 }
  0xd3   : > { %v440_v22 = vadd.f32 %v1293_v20, %v439_v21 }
  0xd4   : > { %v1039_v23 = vpop.f32.mrf.mxu0 }
  0xd5   : > { %v451_v24 = vadd.f32 %v1039_v23, %v1293_v20  ;;  %1131 = vtanh.f32 %v440_v22 }
  0xd6   : > { %v442_v26 = vpop.f32.mrf.mxu0 }
  0xd7   : > { %v443_v27 = vadd.f32 %v1293_v20, %v442_v26  ;;  %1133 = vtanh.f32 %v451_v24 }
  0xd8   : > { %v1042_v28 = vpop.f32.mrf.mxu0 }
  0xd9   : > { %1135 = vtanh.f32 %v443_v27  ;;  %v464_v33 = vadd.f32 %v1042_v28, %v1293_v20 }
  0xda   : > { %1137 = vtanh.f32 %v448_v25  ;;  %v455_v29 = vpop.f32.mrf.mxu0 }
  0xdb   : > { %v456_v30 = vadd.f32 %v1293_v20, %v455_v29 }
  0xdc   : > { %v1043_v31 = vpop.f32.mrf.mxu0 }
  0xdd   : > { %v467_v32 = vadd.f32 %v1043_v31, %v1293_v20  ;;  %1139 = vtanh.f32 %v456_v30 }
  0xde   : > { %v458_v34 = vpop.f32.mrf.mxu0 }
  0xdf   : > { %v459_v35 = vadd.f32 %v1293_v20, %v458_v34  ;;  %1141 = vtanh.f32 %v467_v32 }
  0xe0   : > { %v1046_v36 = vpop.f32.mrf.mxu0 }
  0xe1   : > { %1143 = vtanh.f32 %v459_v35  ;;  %v480_v44 = vadd.f32 %v1046_v36, %v1293_v20 }
  0xe2   : > { %1145 = vtanh.f32 %v464_v33  ;;  %v471_v37 = vpop.f32.mrf.mxu0  ;;  %v1132_v39 = vpop.eup %1131 }
  0xe3   : > { %v472_v38 = vadd.f32 %v1293_v20, %v471_v37 }
  0xe4   : > { %v1047_v40 = vpop.f32.mrf.mxu0  ;;  %v1134_v41 = vpop.eup %1133 }
  0xe5   : > { %v483_v42 = vadd.f32 %v1047_v40, %v1293_v20  ;;  %1147 = vtanh.f32 %v472_v38 }
  0xe6   : > { %v1136_v43 = vpop.eup %1135  ;;  %v474_v45 = vpop.f32.mrf.mxu0 }
  0xe7   : > { %v1138_v46 = vpop.eup %1137  ;;  %v475_v47 = vadd.f32 %v1293_v20, %v474_v45  ;;  %v598_v48 = vpack.c.bf16 %v1136_v43, %v1132_v39  ;;  %1149 = vtanh.f32 %v483_v42 }
  0xe8   : > { %v1050_v49 = vpop.f32.mrf.mxu0  ;;  %v599_v50 = vpack.c.bf16 %v1134_v41, %v1138_v46 }
  0xe9   : > { %1151 = vtanh.f32 %v475_v47  ;;  %1072 = vmatprep.mubr.msk.bf16.mxu1 %vm637_vm1, %v598_v48  ;;  %v496_v58 = vadd.f32 %v1050_v49, %v1293_v20 }
  0xea   : > { %1153 = vtanh.f32 %v480_v44  ;;  %v487_v51 = vpop.f32.mrf.mxu0  ;;  %1073 = vmatmul.mubr.msk.bf16.vlgmr.msra.gmra.mxu1 %vm637_vm1, %v599_v50  ;;  %v1140_v53 = vpop.eup %1139 }
  0xeb   : > { %v488_v52 = vadd.f32 %v1293_v20, %v487_v51 }
  0xec   : > { %v1051_v54 = vpop.f32.mrf.mxu0  ;;  %v1142_v55 = vpop.eup %1141 }
  0xed   : > { %v499_v56 = vadd.f32 %v1051_v54, %v1293_v20  ;;  %1155 = vtanh.f32 %v488_v52 }
  0xee   : > { %v1144_v57 = vpop.eup %1143  ;;  %v490_v59 = vpop.f32.mrf.mxu0 }
  0xef   : > { %v1146_v60 = vpop.eup %1145  ;;  %v491_v61 = vadd.f32 %v1293_v20, %v490_v59  ;;  %v600_v62 = vpack.c.bf16 %v1144_v57, %v1140_v53  ;;  %1157 = vtanh.f32 %v499_v56 }
  0xf0   : > { %v1054_v63 = vpop.f32.mrf.mxu0  ;;  %v601_v0 = vpack.c.bf16 %v1142_v55, %v1146_v60 }
  0xf1   : > { %1159 = vtanh.f32 %v491_v61  ;;  %1076 = vmatprep.mubr.msk.bf16.mxu1 %vm637_vm1, %v600_v62  ;;  %v512_v8 = vadd.f32 %v1054_v63, %v1293_v20 }
  0xf2   : > { %1161 = vtanh.f32 %v496_v58  ;;  %v503_v1 = vpop.f32.mrf.mxu0  ;;  %1077 = vmatmul.mubr.msk.bf16.gmra.mxu1 %vm637_vm1, %v601_v0  ;;  %v1148_v3 = vpop.eup %1147 }
  0xf3   : > { %v504_v2 = vadd.f32 %v1293_v20, %v503_v1 }
  0xf4   : > { %v1055_v4 = vpop.f32.mrf.mxu0  ;;  %v1150_v5 = vpop.eup %1149 }
  0xf5   : > { %v515_v6 = vadd.f32 %v1055_v4, %v1293_v20  ;;  %1163 = vtanh.f32 %v504_v2  ;;  %v1347_v4 = vld [vmem:[%s1425_s4] ss:$0 sm:$0xff] }
  0xf6   : > { %v1152_v7 = vpop.eup %1151  ;;  %v506_v9 = vpop.f32.mrf.mxu0 }
  0xf7   : > { %v1154_v10 = vpop.eup %1153  ;;  %v507_v11 = vadd.f32 %v1293_v20, %v506_v9  ;;  %v602_v12 = vpack.c.bf16 %v1152_v7, %v1148_v3  ;;  %1165 = vtanh.f32 %v515_v6 }
  0xf8   : > { %v1058_v13 = vpop.f32.mrf.mxu0  ;;  %v603_v14 = vpack.c.bf16 %v1150_v5, %v1154_v10 }
  0xf9   : > { %1167 = vtanh.f32 %v507_v11  ;;  %1080 = vmatprep.mubr.msk.bf16.mxu1 %vm637_vm1, %v602_v12  ;;  %v528_v23 = vadd.f32 %v1058_v13, %v1293_v20 }
  0xfa   : > { %1169 = vtanh.f32 %v512_v8  ;;  %v519_v15 = vpop.f32.mrf.mxu0  ;;  %1081 = vmatmul.mubr.msk.bf16.gmra.mxu1 %vm637_vm1, %v603_v14  ;;  %v1156_v17 = vpop.eup %1155 }
  0xfb   : > { %v520_v16 = vadd.f32 %v1293_v20, %v519_v15 }
  0xfc   : > { %v1059_v18 = vpop.f32.mrf.mxu0  ;;  %v1158_v19 = vpop.eup %1157 }
  0xfd   : > { %v531_v21 = vadd.f32 %v1059_v18, %v1293_v20  ;;  %1171 = vtanh.f32 %v520_v16 }
  0xfe   : > { %v1160_v22 = vpop.eup %1159  ;;  %v522_v24 = vpop.f32.mrf.mxu0 }
  0xff   : > { %v1162_v25 = vpop.eup %1161  ;;  %v523_v26 = vadd.f32 %v1293_v20, %v522_v24  ;;  %v604_v27 = vpack.c.bf16 %v1160_v22, %v1156_v17  ;;  %1173 = vtanh.f32 %v531_v21 }
 0x100   : > { %v1062_v28 = vpop.f32.mrf.mxu0  ;;  %v605_v29 = vpack.c.bf16 %v1158_v19, %v1162_v25 }
 0x101   : > { %1175 = vtanh.f32 %v523_v26  ;;  %1084 = vmatprep.mubr.msk.bf16.mxu1 %vm637_vm1, %v604_v27  ;;  %v544_v37 = vadd.f32 %v1062_v28, %v1293_v20 }
 0x102   : > { %1177 = vtanh.f32 %v528_v23  ;;  %v535_v30 = vpop.f32.mrf.mxu0  ;;  %1085 = vmatmul.mubr.msk.bf16.gmra.mxu1 %vm637_vm1, %v605_v29  ;;  %v1164_v32 = vpop.eup %1163 }
 0x103   : > { %v536_v31 = vadd.f32 %v1293_v20, %v535_v30 }
 0x104   : > { %v1063_v33 = vpop.f32.mrf.mxu0  ;;  %v1166_v34 = vpop.eup %1165 }
 0x105   : > { %v547_v35 = vadd.f32 %v1063_v33, %v1293_v20  ;;  %1179 = vtanh.f32 %v536_v31 }
 0x106   : > { %v1168_v36 = vpop.eup %1167  ;;  %v538_v38 = vpop.f32.mrf.mxu0 }
 0x107   : > { %v1170_v39 = vpop.eup %1169  ;;  %v539_v40 = vadd.f32 %v1293_v20, %v538_v38  ;;  %v606_v41 = vpack.c.bf16 %v1168_v36, %v1164_v32  ;;  %1181 = vtanh.f32 %v547_v35 }
 0x108   : > { %v1066_v42 = vpop.f32.mrf.mxu0  ;;  %v607_v43 = vpack.c.bf16 %v1166_v34, %v1170_v39 }
 0x109   : > { %1183 = vtanh.f32 %v539_v40  ;;  %1088 = vmatprep.mubr.msk.bf16.mxu1 %vm637_vm1, %v606_v41  ;;  %v560_v51 = vadd.f32 %v1066_v42, %v1293_v20 }
 0x10a   : > { %1185 = vtanh.f32 %v544_v37  ;;  %v551_v44 = vpop.f32.mrf.mxu0  ;;  %1089 = vmatmul.mubr.msk.bf16.gmra.mxu1 %vm637_vm1, %v607_v43  ;;  %v1172_v46 = vpop.eup %1171 }
 0x10b   : > { %v552_v45 = vadd.f32 %v1293_v20, %v551_v44 }
 0x10c   : > { %v1067_v47 = vpop.f32.mrf.mxu0  ;;  %v1174_v48 = vpop.eup %1173 }
 0x10d   : > { %v563_v49 = vadd.f32 %v1067_v47, %v1293_v20  ;;  %1187 = vtanh.f32 %v552_v45 }
 0x10e   : > { %v1176_v50 = vpop.eup %1175  ;;  %v554_v52 = vpop.f32.mrf.mxu0 }
 0x10f   : > { %v1178_v53 = vpop.eup %1177  ;;  %v555_v54 = vadd.f32 %v1293_v20, %v554_v52  ;;  %v608_v55 = vpack.c.bf16 %v1176_v50, %v1172_v46  ;;  %1189 = vtanh.f32 %v563_v49 }
 0x110   : > { %v609_v56 = vpack.c.bf16 %v1174_v48, %v1178_v53 }
 0x111   : > { %1191 = vtanh.f32 %v555_v54  ;;  %1092 = vmatprep.mubr.msk.bf16.mxu1 %vm637_vm1, %v608_v55 }
 0x112   : > { %1193 = vtanh.f32 %v560_v51  ;;  %1093 = vmatmul.mubr.msk.bf16.gmra.mxu1 %vm637_vm1, %v609_v56  ;;  %v1180_v57 = vpop.eup %1179 }
 0x114   : > { %v1182_v58 = vpop.eup %1181 }
 0x116   : > { %v1184_v59 = vpop.eup %1183 }
 0x117   : > { %v1186_v60 = vpop.eup %1185  ;;  %v610_v61 = vpack.c.bf16 %v1184_v59, %v1180_v57 }
 0x118   : > { %v611_v62 = vpack.c.bf16 %v1182_v58, %v1186_v60 }
 0x119   : > { %1096 = vmatprep.mubr.msk.bf16.mxu1 %vm637_vm1, %v610_v61 }
 0x11a   : > { %1097 = vmatmul.mubr.msk.bf16.gmra.mxu1 %vm637_vm1, %v611_v62  ;;  %v1188_v20 = vpop.eup %1187 }
 0x11c   : > { %v1190_v63 = vpop.eup %1189 }
 0x11e   : > { %v1192_v0 = vpop.eup %1191 }
 0x11f   : > { %v1194_v1 = vpop.eup %1193  ;;  %v612_v2 = vpack.c.bf16 %v1192_v0, %v1188_v20 }
 0x120   : > { %v613_v3 = vpack.c.bf16 %v1190_v63, %v1194_v1 }
 0x121   : > { %1100 = vmatprep.mubr.msk.bf16.mxu1 %vm637_vm1, %v612_v2 }
 0x122   : > { %1101 = vmatmul.mubr.msk.bf16.gmra.mxu1 %vm637_vm1, %v613_v3 }
 0x1aa   : > { %v1074_v5 = vpop.f32.mrf.mxu1 }
 0x1ab   : > { %v729_v6 = vadd.f32 %v1074_v5, %v1347_v4 }
 0x1ac   : > { %v720_v7 = vpop.f32.mrf.mxu1 }
 0x1ad   : > { %849 = vst [vmem:[%s1352_s13 + $0x10] sm:$0xff] %v729_v6  ;;  %v721_v8 = vadd.f32 %v1347_v4, %v720_v7 }
 0x1ae   : > { %v1075_v9 = vpop.f32.mrf.mxu1 }
 0x1af   : > { %847 = vst [vmem:[%s1352_s13] sm:$0xff] %v721_v8  ;;  %v732_v10 = vadd.f32 %v1075_v9, %v1347_v4 }
 0x1b0   : > { %v723_v11 = vpop.f32.mrf.mxu1 }
 0x1b1   : > { %850 = vst [vmem:[%s1352_s13 + $0x18] sm:$0xff] %v732_v10  ;;  %v724_v12 = vadd.f32 %v1347_v4, %v723_v11 }
 0x1b2   : > { %v1078_v13 = vpop.f32.mrf.mxu1 }
 0x1b3   : > { %848 = vst [vmem:[%s1352_s13 + $0x8] sm:$0xff] %v724_v12  ;;  %v745_v14 = vadd.f32 %v1078_v13, %v1347_v4 }
 0x1b4   : > { %v736_v15 = vpop.f32.mrf.mxu1 }
 0x1b5   : > { %853 = vst [vmem:[%s1352_s13 + $0x30] sm:$0xff] %v745_v14  ;;  %v737_v16 = vadd.f32 %v1347_v4, %v736_v15 }
 0x1b6   : > { %v1079_v17 = vpop.f32.mrf.mxu1 }
 0x1b7   : > { %851 = vst [vmem:[%s1352_s13 + $0x20] sm:$0xff] %v737_v16  ;;  %v748_v18 = vadd.f32 %v1079_v17, %v1347_v4 }
 0x1b8   : > { %v739_v19 = vpop.f32.mrf.mxu1 }
 0x1b9   : > { %854 = vst [vmem:[%s1352_s13 + $0x38] sm:$0xff] %v748_v18  ;;  %v740_v21 = vadd.f32 %v1347_v4, %v739_v19 }
 0x1ba   : > { %v1082_v22 = vpop.f32.mrf.mxu1 }
 0x1bb   : > { %852 = vst [vmem:[%s1352_s13 + $0x28] sm:$0xff] %v740_v21  ;;  %v761_v23 = vadd.f32 %v1082_v22, %v1347_v4 }
 0x1bc   : > { %v752_v24 = vpop.f32.mrf.mxu1 }
 0x1bd   : > { %857 = vst [vmem:[%s1352_s13 + $0x50] sm:$0xff] %v761_v23  ;;  %v753_v25 = vadd.f32 %v1347_v4, %v752_v24 }
 0x1be   : > { %v1083_v26 = vpop.f32.mrf.mxu1 }
 0x1bf   : > { %855 = vst [vmem:[%s1352_s13 + $0x40] sm:$0xff] %v753_v25  ;;  %v764_v27 = vadd.f32 %v1083_v26, %v1347_v4 }
 0x1c0   : > { %v755_v28 = vpop.f32.mrf.mxu1 }
 0x1c1   : > { %858 = vst [vmem:[%s1352_s13 + $0x58] sm:$0xff] %v764_v27  ;;  %v756_v29 = vadd.f32 %v1347_v4, %v755_v28 }
 0x1c2   : > { %v1086_v30 = vpop.f32.mrf.mxu1 }
 0x1c3   : > { %856 = vst [vmem:[%s1352_s13 + $0x48] sm:$0xff] %v756_v29  ;;  %v777_v31 = vadd.f32 %v1086_v30, %v1347_v4 }
 0x1c4   : > { %v768_v32 = vpop.f32.mrf.mxu1 }
 0x1c5   : > { %861 = vst [vmem:[%s1352_s13 + $0x70] sm:$0xff] %v777_v31  ;;  %v769_v33 = vadd.f32 %v1347_v4, %v768_v32 }
 0x1c6   : > { %v1087_v34 = vpop.f32.mrf.mxu1 }
 0x1c7   : > { %859 = vst [vmem:[%s1352_s13 + $0x60] sm:$0xff] %v769_v33  ;;  %v780_v35 = vadd.f32 %v1087_v34, %v1347_v4 }
 0x1c8   : > { %v771_v36 = vpop.f32.mrf.mxu1 }
 0x1c9   : > { %862 = vst [vmem:[%s1352_s13 + $0x78] sm:$0xff] %v780_v35  ;;  %v772_v37 = vadd.f32 %v1347_v4, %v771_v36 }
 0x1ca   : > { %v1090_v38 = vpop.f32.mrf.mxu1 }
 0x1cb   : > { %860 = vst [vmem:[%s1352_s13 + $0x68] sm:$0xff] %v772_v37  ;;  %v793_v39 = vadd.f32 %v1090_v38, %v1347_v4 }
 0x1cc   : > { %v784_v40 = vpop.f32.mrf.mxu1 }
 0x1cd   : > { %865 = vst [vmem:[%s1352_s13 + $0x90] sm:$0xff] %v793_v39  ;;  %v785_v41 = vadd.f32 %v1347_v4, %v784_v40 }
 0x1ce   : > { %v1091_v42 = vpop.f32.mrf.mxu1 }
 0x1cf   : > { %863 = vst [vmem:[%s1352_s13 + $0x80] sm:$0xff] %v785_v41  ;;  %v796_v43 = vadd.f32 %v1091_v42, %v1347_v4 }
 0x1d0   : > { %v787_v44 = vpop.f32.mrf.mxu1 }
 0x1d1   : > { %866 = vst [vmem:[%s1352_s13 + $0x98] sm:$0xff] %v796_v43  ;;  %v788_v45 = vadd.f32 %v1347_v4, %v787_v44 }
 0x1d2   : > { %v1094_v46 = vpop.f32.mrf.mxu1 }
 0x1d3   : > { %864 = vst [vmem:[%s1352_s13 + $0x88] sm:$0xff] %v788_v45  ;;  %v809_v47 = vadd.f32 %v1094_v46, %v1347_v4 }
 0x1d4   : > { %v800_v48 = vpop.f32.mrf.mxu1 }
 0x1d5   : > { %869 = vst [vmem:[%s1352_s13 + $0xb0] sm:$0xff] %v809_v47  ;;  %v801_v49 = vadd.f32 %v1347_v4, %v800_v48 }
 0x1d6   : > { %v1095_v50 = vpop.f32.mrf.mxu1 }
 0x1d7   : > { %867 = vst [vmem:[%s1352_s13 + $0xa0] sm:$0xff] %v801_v49  ;;  %v812_v51 = vadd.f32 %v1095_v50, %v1347_v4 }
 0x1d8   : > { %v803_v52 = vpop.f32.mrf.mxu1 }
 0x1d9   : > { %870 = vst [vmem:[%s1352_s13 + $0xb8] sm:$0xff] %v812_v51  ;;  %v804_v53 = vadd.f32 %v1347_v4, %v803_v52 }
 0x1da   : > { %v1098_v54 = vpop.f32.mrf.mxu1 }
 0x1db   : > { %868 = vst [vmem:[%s1352_s13 + $0xa8] sm:$0xff] %v804_v53  ;;  %v825_v55 = vadd.f32 %v1098_v54, %v1347_v4 }
 0x1dc   : > { %v816_v56 = vpop.f32.mrf.mxu1 }
 0x1dd   : > { %873 = vst [vmem:[%s1352_s13 + $0xd0] sm:$0xff] %v825_v55  ;;  %v817_v57 = vadd.f32 %v1347_v4, %v816_v56 }
 0x1de   : > { %v1099_v58 = vpop.f32.mrf.mxu1 }
 0x1df   : > { %871 = vst [vmem:[%s1352_s13 + $0xc0] sm:$0xff] %v817_v57  ;;  %v828_v59 = vadd.f32 %v1099_v58, %v1347_v4 }
 0x1e0   : > { %v819_v60 = vpop.f32.mrf.mxu1 }
 0x1e1   : > { %874 = vst [vmem:[%s1352_s13 + $0xd8] sm:$0xff] %v828_v59  ;;  %v820_v61 = vadd.f32 %v1347_v4, %v819_v60 }
 0x1e2   : > { %v1102_v62 = vpop.f32.mrf.mxu1 }
 0x1e3   : > { %872 = vst [vmem:[%s1352_s13 + $0xc8] sm:$0xff] %v820_v61  ;;  %v841_v20 = vadd.f32 %v1102_v62, %v1347_v4 }
 0x1e4   : > { %v832_v63 = vpop.f32.mrf.mxu1 }
 0x1e5   : > { %877 = vst [vmem:[%s1352_s13 + $0xf0] sm:$0xff] %v841_v20  ;;  %v833_v0 = vadd.f32 %v1347_v4, %v832_v63 }
 0x1e6   : > { %v1103_v1 = vpop.f32.mrf.mxu1 }
 0x1e7   : > { %875 = vst [vmem:[%s1352_s13 + $0xe0] sm:$0xff] %v833_v0  ;;  %v844_v2 = vadd.f32 %v1103_v1, %v1347_v4 }
 0x1e8   : > { %v835_v3 = vpop.f32.mrf.mxu1 }
 0x1e9   : > { %878 = vst [vmem:[%s1352_s13 + $0xf8] sm:$0xff] %v844_v2  ;;  %v836_v5 = vadd.f32 %v1347_v4, %v835_v3 }
 0x1eb   : > { %876 = vst [vmem:[%s1352_s13 + $0xe8] sm:$0xff] %v836_v5 }
 0x1ec PF: > { %s15_s18 = sadd.s32 1, %s1201_s18  }
 0x1ed   : > { %p12_p4 = scmp.ge.s32.totalorder %s15_s18, 4  }
 0x1ef   :  { %14 = sbr.rel (!%p12_p4) target bundleno = 1 (0x1), region = 70 }

</bundles_post_ra>
